<compile_context>
chip_gen: v6e
topology: v6e:2x2x1
jax: 0.10.0
libtpu: 0.0.40
codegen_flags: <defaults>
</compile_context>

<pallas_src>
import functools

import jax
import jax.numpy as jnp
from jax.experimental import pallas as pl
from jax.experimental.pallas import tpu as pltpu


def _ln_modulate_kernel(x_ref, scale1_ref, shift_ref, o_ref, *, eps):
    """Per grid point (b, s_tile): LayerNorm over last dim + modulation.

    x_ref:      (1, TS, D)  native dtype tile of x
    scale1_ref: (B, D)      f32, precomputed (1 + scale_msa), resident in VMEM
    shift_ref:  (B, D)      f32, shift_msa, resident in VMEM
    o_ref:      (1, TS, D)  output tile
    """
    bi = pl.program_id(0)

    # LayerNorm (no affine, biased variance, eps inside the sqrt) in f32.
    x = x_ref[...].astype(jnp.float32)                       # (1, TS, D)
    mean = jnp.mean(x, axis=-1, keepdims=True)
    xc = x - mean
    var = jnp.mean(xc * xc, axis=-1, keepdims=True)
    xn = xc * jax.lax.rsqrt(var + eps)

    # Per-batch modulation row (already f32; (1+scale) precomputed in wrapper).
    scale1 = scale1_ref[pl.ds(bi, 1), :][:, None, :]          # (1, 1, D)
    shift = shift_ref[pl.ds(bi, 1), :][:, None, :]            # (1, 1, D)

    o_ref[...] = (xn * scale1 + shift).astype(o_ref.dtype)


def _choose_seq_tile(S, D):
    """Largest sequence tile that keeps double-buffered in/out (+ f32 working
    copy) comfortably under the scoped-VMEM budget on any TPU generation."""
    budget_bytes = 24 << 20            # conservative; works v5e/v6e/v7x
    max_rows = max(8, budget_bytes // (32 * max(D, 1)))   # ~32 B/elem of tile
    if S <= max_rows:
        return S
    return max(8, (max_rows // 8) * 8)


def ada_layer_norm_zero(x, embed, w, b, *, eps=1e-5, seq_tile=None):
    """x: (B, S, D), embed: (B, D), w: (D, 6D) (= PyTorch weight.T), b: (1, 6D)."""
    B, S, D = x.shape
    assert embed.shape == (B, D)
    assert w.shape == (D, 6 * D)
    assert b.shape == (1, 6 * D)

    # ---- hoisted tiny modulation matmul (XLA; not worth a streaming kernel) ----
    e = embed.astype(jnp.float32)
    e = e * jax.nn.sigmoid(e)                                 # SiLU
    mod = jnp.dot(e, w, preferred_element_type=jnp.float32)   # (B, 6D), f32 accum
    mod = mod + b[0].astype(jnp.float32)

    # chunk(6, dim=1) -- PyTorch order
    shift_msa = mod[:, 0 * D:1 * D]
    scale_msa = mod[:, 1 * D:2 * D]
    gate_msa = mod[:, 2 * D:3 * D]
    shift_mlp = mod[:, 3 * D:4 * D]
    scale_mlp = mod[:, 4 * D:5 * D]
    gate_mlp = mod[:, 5 * D:6 * D]

    # Precompute (1 + scale_msa) once; kernel inputs stay f32 (tiny, per-(B,D)).
    scale1 = 1.0 + scale_msa
    shift = shift_msa

    TS = seq_tile if seq_tile is not None else _choose_seq_tile(S, D)
    grid = (B, pl.cdiv(S, TS))

    x_out = pl.pallas_call(
        functools.partial(_ln_modulate_kernel, eps=eps),
        out_shape=jax.ShapeDtypeStruct((B, S, D), x.dtype),
        grid=grid,
        in_specs=[
            pl.BlockSpec((1, TS, D), lambda bi, si: (bi, si, 0)),   # stream x
            pl.BlockSpec((B, D), lambda bi, si: (0, 0)),            # resident
            pl.BlockSpec((B, D), lambda bi, si: (0, 0)),            # resident
        ],
        out_specs=pl.BlockSpec((1, TS, D), lambda bi, si: (bi, si, 0)),
        compiler_params=pltpu.CompilerParams(
            dimension_semantics=("parallel", "parallel"),
            vmem_limit_bytes=48 << 20,      # fits v7x's 64 MiB physical VMEM
        ),
    )(x, scale1, shift)

    # Aux outputs are emitted from the wrapper (pure functions of `mod`);
    # keep them in the Linear/embed dtype like PyTorch does.
    aux_dtype = embed.dtype
    return (x_out,
            gate_msa.astype(aux_dtype),
            shift_mlp.astype(aux_dtype),
            scale_mlp.astype(aux_dtype),
            gate_mlp.astype(aux_dtype))


def _reference(x, embed, w, b, eps=1e-5):
    e = embed * jax.nn.sigmoid(embed)
    mod = e @ w + b[0]
    D = x.shape[-1]
    shift_msa, scale_msa, gate_msa, shift_mlp, scale_mlp, gate_mlp = (
        mod[:, i * D:(i + 1) * D] for i in range(6))
    mean = jnp.mean(x, axis=-1, keepdims=True)
    var = jnp.mean((x - mean) ** 2, axis=-1, keepdims=True)
    xn = (x - mean) / jnp.sqrt(var + eps)
    out = xn * (1.0 + scale_msa)[:, None, :] + shift_msa[:, None, :]
    return out, gate_msa, shift_mlp, scale_mlp, gate_mlp


if __name__ == "__main__":
    # Small shapes consistent with AdaLayerNormZero(in_features=D).
    B, S, D = 2, 16, 128

    key = jax.random.PRNGKey(0)
    kx, ke, kw, kb = jax.random.split(key, 4)

    x = jax.random.normal(kx, (B, S, D), dtype=jnp.float32)
    embed = jax.random.normal(ke, (B, D), dtype=jnp.float32)
    # nn.Linear(D, 6D)-style init, stored as (in, out) so kernel does e @ w + b.
    bound = 1.0 / (D ** 0.5)
    w = jax.random.uniform(kw, (D, 6 * D), minval=-bound, maxval=bound, dtype=jnp.float32)
    b = jax.random.uniform(kb, (1, 6 * D), minval=-bound, maxval=bound, dtype=jnp.float32)

    # seq_tile=8 exercises a real (B, S/TS) grid even at this toy size.
    outs = ada_layer_norm_zero(x, embed, w, b, seq_tile=8)
    outs = jax.block_until_ready(outs)

    refs = _reference(x, embed, w, b)
    for o, r in zip(outs, refs):
        assert o.shape == r.shape
        assert jnp.allclose(o, r, atol=1e-4, rtol=1e-4)

    print("KERNEL_OK")
</pallas_src>

<mosaic_0001>
module attributes {stable_mosaic.version = 11 : i64} {
  func.func @_ln_modulate_kernel(%arg0: i32, %arg1: i32, %arg2: memref<1x8x128xf32, #tpu.memory_space<vmem>>, %arg3: memref<2x128xf32, #tpu.memory_space<vmem>>, %arg4: memref<2x128xf32, #tpu.memory_space<vmem>>, %arg5: memref<1x8x128xf32, #tpu.memory_space<vmem>>) attributes {dimension_semantics = [#tpu.dimension_semantics<parallel>, #tpu.dimension_semantics<parallel>], iteration_bounds = array<i64: 2, 2>, scalar_prefetch = 0 : i64, scratch_operands = 0 : i64, tpu.core_type = #tpu.core_type<tc>, window_params = [{transform_indices = @transform_0, window_bounds = array<i64: 1, 8, 128>}, {pipeline_mode = #tpu.pipeline_mode<synchronous>, transform_indices = @transform_1, window_bounds = array<i64: 2, 128>}, {pipeline_mode = #tpu.pipeline_mode<synchronous>, transform_indices = @transform_2, window_bounds = array<i64: 2, 128>}, {transform_indices = @transform_3, window_bounds = array<i64: 1, 8, 128>}]} {
    %c0 = arith.constant 0 : index
    %c0_0 = arith.constant 0 : index
    %c0_1 = arith.constant 0 : index
    %0 = vector.load %arg2[%c0, %c0_0, %c0_1] : memref<1x8x128xf32, #tpu.memory_space<vmem>>, vector<1x8x128xf32>
    %cst = arith.constant dense<0.000000e+00> : vector<1x8xf32>
    %1 = vector.multi_reduction <add>, %0, %cst [2] : vector<1x8x128xf32> to vector<1x8xf32>
    %2 = vector.shape_cast %1 : vector<1x8xf32> to vector<1x8x1xf32>
    %cst_2 = arith.constant 1.280000e+02 : f32
    %3 = vector.broadcast %cst_2 : f32 to vector<1x8x1xf32>
    %4 = arith.divf %2, %3 : vector<1x8x1xf32>
    %5 = vector.broadcast %4 : vector<1x8x1xf32> to vector<1x8x128xf32>
    %6 = arith.subf %0, %5 : vector<1x8x128xf32>
    %7 = arith.mulf %6, %6 : vector<1x8x128xf32>
    %cst_3 = arith.constant dense<0.000000e+00> : vector<1x8xf32>
    %8 = vector.multi_reduction <add>, %7, %cst_3 [2] : vector<1x8x128xf32> to vector<1x8xf32>
    %9 = vector.shape_cast %8 : vector<1x8xf32> to vector<1x8x1xf32>
    %cst_4 = arith.constant 1.280000e+02 : f32
    %10 = vector.broadcast %cst_4 : f32 to vector<1x8x1xf32>
    %11 = arith.divf %9, %10 : vector<1x8x1xf32>
    %cst_5 = arith.constant 9.99999974E-6 : f32
    %12 = vector.broadcast %cst_5 : f32 to vector<1x8x1xf32>
    %13 = arith.addf %11, %12 : vector<1x8x1xf32>
    %14 = math.rsqrt %13 : vector<1x8x1xf32>
    %15 = vector.broadcast %14 : vector<1x8x1xf32> to vector<1x8x128xf32>
    %16 = arith.mulf %6, %15 : vector<1x8x128xf32>
    %17 = arith.index_cast %arg0 : i32 to index
    %c0_6 = arith.constant 0 : index
    %18 = vector.load %arg3[%17, %c0_6] : memref<2x128xf32, #tpu.memory_space<vmem>>, vector<1x128xf32>
    %19 = vector.shape_cast %18 : vector<1x128xf32> to vector<1x1x128xf32>
    %20 = arith.index_cast %arg0 : i32 to index
    %c0_7 = arith.constant 0 : index
    %21 = vector.load %arg4[%20, %c0_7] : memref<2x128xf32, #tpu.memory_space<vmem>>, vector<1x128xf32>
    %22 = vector.shape_cast %21 : vector<1x128xf32> to vector<1x1x128xf32>
    %23 = vector.broadcast %19 : vector<1x1x128xf32> to vector<1x8x128xf32>
    %24 = arith.mulf %16, %23 : vector<1x8x128xf32>
    %25 = vector.broadcast %22 : vector<1x1x128xf32> to vector<1x8x128xf32>
    %26 = arith.addf %24, %25 : vector<1x8x128xf32>
    %c0_8 = arith.constant 0 : index
    %c0_9 = arith.constant 0 : index
    %c0_10 = arith.constant 0 : index
    %27 = vector.load %arg5[%c0_8, %c0_9, %c0_10] : memref<1x8x128xf32, #tpu.memory_space<vmem>>, vector<1x8x128xf32>
    tpu.vector_store %arg5[%c0_8, %c0_9, %c0_10], %26 {strides = array<i32>} : memref<1x8x128xf32, #tpu.memory_space<vmem>>, vector<1x8x128xf32>,
    return
  }
  func.func @transform_0(%arg0: i32, %arg1: i32) -> (i32, i32, i32) {
    %c0_i32 = arith.constant 0 : i32
    %c0_i32_0 = arith.constant 0 : i32
    return %arg0, %arg1, %c0_i32 : i32, i32, i32
  }
  func.func @transform_1(%arg0: i32, %arg1: i32) -> (i32, i32) {
    %c0_i32 = arith.constant 0 : i32
    %c0_i32_0 = arith.constant 0 : i32
    %c0_i32_1 = arith.constant 0 : i32
    return %c0_i32, %c0_i32_0 : i32, i32
  }
  func.func @transform_2(%arg0: i32, %arg1: i32) -> (i32, i32) {
    %c0_i32 = arith.constant 0 : i32
    %c0_i32_0 = arith.constant 0 : i32
    %c0_i32_1 = arith.constant 0 : i32
    return %c0_i32, %c0_i32_0 : i32, i32
  }
  func.func @transform_3(%arg0: i32, %arg1: i32) -> (i32, i32, i32) {
    %c0_i32 = arith.constant 0 : i32
    %c0_i32_0 = arith.constant 0 : i32
    return %arg0, %arg1, %c0_i32 : i32, i32, i32
  }
}

</mosaic_0001>

<bundles_post_ra>
// kernel: tpu_custom_call.1
= control target key start
LH: loop header
LB: loop body
LE: loop exit
PB: predicated region body
PF: predicated region fallthrough
CT: control target
= control target key end

     0   :  { %s835_s0 = inlined_call_operand.hbm [shape: f32[2,16,128], index: 0, kind: input, shape index: {}]   ;;  %s836_s1 = inlined_call_operand.hbm [shape: f32[2,128], index: 1, kind: input, shape index: {}]   ;;  %s837_s2 = inlined_call_operand.vmem [shape: f32[2,128], index: 2, kind: input, shape index: {}]   ;;  %s838_s3 = inlined_call_operand.hbm [shape: f32[2,16,128], index: 3, kind: output, shape index: {}]  }
   0x1   :  { %844 = sst [smem:[#allocation14_spill]] %s836_s1 }
   0x2   :  { %845 = sst [smem:[#allocation15_spill]] %s838_s3 }
   0x3   :  { %8 = vsyncpa [#allocation3], 0 }
   0x4   :  { %10 = vsyncpa [#allocation3 + $0x1], 0 }
   0x5   :  { %11 = vsyncpa [#allocation6], 0 }
   0x6   :  { %12 = vsyncpa [#allocation4], 0 }
   0x7   :  { %14 = vsyncpa [#allocation4 + $0x1], 0  ;;  %s647_s12 = smov 0   ;;  %s649_s13 = smov 0  }
   0x8   :  { %s651_s14 = smov 0   ;;  %s653_s15 = smov 0  }
   0x9   :  { %s655_s16 = smov 0   ;;  %s657_s17 = smov 0  }
   0xa   :  { %s659_s18 = smov 0   ;;  %s661_s19 = smov 0  }
   0xb LB: > { %846 = sst [smem:[#allocation11_spill]] %s594_s12  ;;  %s358_s20 = sadd.s32 4294967295, %s622_s19   ;;  %s622_s19 = sphi %s661_s19, %s20_s19   ;;  %s618_s18 = sphi %s659_s18, %s870_s18   ;;  %s614_s17 = sphi %s657_s17, %s869_s17   ;;  %s610_s16 = sphi %s655_s16, %s868_s16   ;;  %s606_s15 = sphi %s653_s15, %s867_s15   ;;  %s602_s14 = sphi %s651_s14, %s866_s14   ;;  %s598_s13 = sphi %s649_s13, %s865_s13   ;;  %s594_s12 = sphi %s647_s12, %s864_s12  }
   0xc   : > { %s359_s21 = sadd.s32 4294967294, %s622_s19   ;;  %p54_p0 = scmp.ne.s32.totalorder %s598_s13, %s594_s12 }
   0xd   : > { %p691_p1 = scmp.eq.s32.totalorder %s358_s20, 0  ;;  %p695_p2 = scmp.eq.s32.totalorder %s358_s20, 3 }
   0xe   : > { %p128_p3 = scmp.eq.s32.totalorder %s359_s21, 3  ;;  %p360_p5 = scmp.ge.s32.totalorder %s622_s19, 1 }
   0xf   : > { %p701_p4 = por %p691_p1, %p54_p0  ;;  %p135_p7 = scmp.lt.s32.totalorder %s622_s19, 5 }
  0x10   : > { %p706_p6 = por %p128_p3, %p54_p0  ;;  %s624_s27 = smov [#allocation5]  }
  0x11   : > { %p711_p8 = pnand %p360_p5, %p135_p7  ;;  %s148_s28 = sshll.u32 %s624_s27, 4  ;;  %s149_s28 = int_to_ptr.vmem [resolvable:$true] %s148_s28 }
  0x12   : > { %s850_s25 = scalar_select %p706_p6, 1, 0 }
  0x13   : > { %p385_p9 = pneg %p711_p8  ;;  %s29_s29 = sadd.s32 1, %s614_s17 }
  0x14   : > { %851 = sst [smem:[#allocation12_spill]] %s850_s25  ;;  %s479_s30 = scalar_lea.vmem %s149_s28, 32 }
  0x15   : > { %p386_p10 = pnand %p385_p9, %p691_p1  ;;  %p480_p12 = scmp.ne.s32.totalorder %s149_s28, %s479_s30 }
  0x16   : > { %p487_p3 = scmp.lt.s32.totalorder %s149_s28, %s149_s28  ;;  %p488_p6 = scmp.lt.s32.totalorder %s479_s30, %s479_s30 }
  0x17   : > { %p470_p11 = pneg %p386_p10 }
  0x18   : > { %p489_p5 = por %p488_p6, %p487_p3 }
  0x19   : > { %p482_p13 = pnand %p480_p12, %p470_p11 }
  0x1b   : > { %p483_p0 = pneg %p482_p13 }
  0x1d   : > { %p490_p7 = pnand %p489_p5, %p483_p0 }
  0x1f   : > { %493 = shalt.err (!%p490_p7)
}
  0x20   : > { %s853_s1 = sld [smem:[#allocation14_spill]]  ;;  %p30_p9 = scmp.ge.s32.totalorder %s29_s29, 2 }
  0x21   : > { %s32_s6 = sadd.s32 1, %s618_s18  ;;  %s41_s7 = sadd.s32 1, %s602_s14 }
  0x22   : > { %p48_p6 = scmp.ne.s32.totalorder %s602_s14, %s598_s13  ;;  %s872_s29 = smov (%p30_p9, %s29_s29), 0 }
  0x23   : > { %854 = sst [smem:[#allocation13_spill]] %s872_s29  ;;  %s874_s6 = smov (!%p30_p9, %s32_s6), %s618_s18 }
  0x24   : > { %s37_s8 = ssub.s32 %s614_s17, %s872_s29  ;;  %p49_p11 = scmp.eq.s32.totalorder %s622_s19, 0 }
  0x25   : > { %p34_p12 = scmp.ge.s32.totalorder %s874_s6, 2  ;;  %p735_p13 = por %p695_p2, %p48_p6 }
  0x26   : > { %388 = dma.hbm_to_vmem [thread:$0]  (!%p386_p10), %s853_s1, 32, %s149_s28, [#allocation6]  }
  0x27   : > { %s855_s9 = scalar_select %p735_p13, 1, 0 }
  0x28   : > { %p739_p10 = por %p49_p11, %p48_p6  ;;  %p398_p0 = scmp.lt.s32.totalorder %s622_s19, 4 }
  0x29   : > { %s876_s6 = smov (%p34_p12, %s874_s6), 0  ;;  %s162_s11 = sand.u32 1, %s602_s14  }
  0x2a   : > { %s364_s20 = sshll.u32 %s618_s18, 1  ;;  %s36_s21 = ssub.s32 %s618_s18, %s876_s6 }
  0x2b   : > { %s38_s27 = sor.u32 %s37_s8, %s36_s21  ;;  %s363_s28 = sshll.u32 %s162_s11, 3 }
  0x2c   : > { %p39_p3 = scmp.eq.s32.totalorder %s38_s27, 0  ;;  %s171_s23 = sadd.s32 %s614_s17, %s364_s20 }
  0x2d   : > { %s166_s30 = scalar_lea.vmem [#allocation2], %s363_s28  ;;  %s365_s1 = sshll.u32 %s171_s23, 7 }
  0x2e   : > { %s175_s4 = sshll.u32 %s166_s30, 4  ;;  %s173_s12 = scalar_lea.hbm %s835_s0, %s365_s1  ;;  %s176_s4 = int_to_ptr.vmem [resolvable:$true] %s175_s4 }
  0x2f   : > { %s752_s5 = scalar_select %p39_p3, %s602_s14, %s41_s7  }
  0x30   : > { %p761_p2 = pnand %p398_p0, %p739_p10  ;;  %s163_s8 = scalar_lea.sflag [#allocation3], %s162_s11 }
  0x31   : > { %s507_s20 = scalar_lea.vmem %s176_s4, 128  ;;  %s625_s7 = smov [#allocation2]  }
  0x32   : > { %p496_p5 = pneg %p761_p2  ;;  %p508_p7 = scmp.ne.s32.totalorder %s176_s4, %s507_s20 }
  0x33   : > { %s512_s21 = sshll.u32 %s625_s7, 4  ;;  %s513_s21 = int_to_ptr.vmem [resolvable:$false] %s512_s21 }
  0x34   : > { %p510_p9 = pnand %p508_p7, %p496_p5  ;;  %s514_s27 = scalar_lea.vmem %s513_s21, 256 }
  0x35   : > { %p515_p11 = scmp.lt.s32.totalorder %s176_s4, %s513_s21  ;;  %p516_p12 = scmp.lt.s32.totalorder %s514_s27, %s507_s20 }
  0x36   : > { %p511_p6 = pneg %p510_p9 }
  0x37   : > { %p517_p3 = por %p516_p12, %p515_p11 }
  0x39   : > { %p518_p13 = pnand %p517_p3, %p511_p6 }
  0x3b   : > { %521 = shalt.err (!%p518_p13)
}
  0x3c   : > { %392 = dma.hbm_to_vmem [thread:$0]  (!%p761_p2), %s173_s12, 128, %s176_s4, %s163_s8  }
  0x3d   : > { %184 = sbr.rel (%p711_p8) target bundleno = 389 (0x185), region = 32  ;;  %s772_s1 = sand.u32 (!%p711_p8), 1, %s598_s13  }
  0x3e   : > { %s367_s25 = sshll.u32 (!%p711_p8), %s772_s1, 3  ;;  %s187_s29 = scalar_lea.sflag (!%p711_p8), [#allocation3], %s772_s1 }
  0x3f   : > { %s190_s10 = scalar_lea.vmem (!%p711_p8), [#allocation2], %s367_s25 }
  0x42   : > { %581 = dma.done.wait (%p701_p4), %s187_s29, 128  }
  0x43   : > { %583 = vsyncadd (%p701_p4), %s187_s29, 4294967168 }
  0x44   : > { %585 = dma.done.wait (%p691_p1), [#allocation6], 32  }
  0x45   : > { %587 = vsyncadd (%p691_p1), [#allocation6], 4294967264  ;;  %v217_v0 = vld [vmem:[%s190_s10] sm:$0xff]  ;;  %s373_s3 = sshll.u32 %s610_s16, 1  ;;  %s232_s22 = scalar_lea.vmem %s837_s2, %s610_s16 }
  0x46   : > { %218 = vadd.xlane.f32.xlu0 %v217_v0  ;;  %s257_s26 = sadd.s32 %s606_s15, %s373_s3  ;;  %s230_s11 = scalar_lea.vmem [#allocation5], %s610_s16  ;;  %v371_v11 = vld [vmem:[%s232_s22] ss:$0 sm:$0xff] }
  0x47   : > { %v370_v9 = vld [vmem:[%s230_s11] ss:$0 sm:$0xff]  ;;  %s374_s28 = sshll.u32 %s257_s26, 7  ;;  %s216_s23 = scalar_lea.vmem [#allocation7], %s367_s25 }
  0x48   : > { %s261_s30 = sshll.u32 %s216_s23, 4  ;;  %s858_s20 = sld [smem:[#allocation15_spill]]  ;;  %s262_s30 = int_to_ptr.vmem [resolvable:$true] %s261_s30 }
  0x49   : > { %s246_s21 = scalar_lea.sflag [#allocation4], %s772_s1  ;;  %s522_s27 = scalar_lea.vmem %s262_s30, 128 }
  0x4a   : > { %p523_p1 = scmp.ne.s32.totalorder %s262_s30, %s522_s27  ;;  %p859_p4 = scmp.ne.s32.totalorder %s855_s9, 0 }
  0x4b   : > { %s626_s15 = smov [#allocation7]  }
  0x4c   : > { %p524_p8 = pnand %p523_p1, %p859_p4  ;;  %s526_s16 = sshll.u32 %s626_s15, 4  ;;  %s527_s16 = int_to_ptr.vmem [resolvable:$false] %s526_s16 }
  0x4d   : > { %s528_s29 = scalar_lea.vmem %s527_s16, 256  ;;  %p529_p10 = scmp.lt.s32.totalorder %s262_s30, %s527_s16 }
  0x4e   : > { %s259_s7 = scalar_lea.hbm %s858_s20, %s374_s28  ;;  %p525_p13 = pneg %p524_p8 }
  0x4f   : > { %p530_p0 = scmp.lt.s32.totalorder %s528_s29, %s522_s27 }
  0x51   : > { %p531_p2 = por %p530_p0, %p529_p10 }
  0x53   : > { %p532_p5 = pnand %p531_p2, %p525_p13 }
  0xcf   : > { %v219_v1 = vpop.xlane.xlu0 %218 }
  0xd0   : > { %v221_v2 = vmul.f32 0.0078125, %v219_v1 }
  0xd2   : > { %v222_v3 = vsub.f32 %v217_v0, %v221_v2 }
  0xd4   : > { %v223_v4 = vmul.f32 %v222_v3, %v222_v3 }
  0xd6   : > { %224 = vadd.xlane.f32.xlu0 %v223_v4 }
 0x15f   : > { %v225_v5 = vpop.xlane.xlu0 %224 }
 0x160   : > { %v226_v6 = vmul.f32 0.0078125, %v225_v5 }
 0x162   : > { %v227_v7 = vadd.f32 1e-05, %v226_v6 }
 0x164   : > { %466 = vrsqrt.f32 %v227_v7 }
 0x171   : > { %v467_v8 = vpop.eup %466 }
 0x172   : > { %v229_v10 = vmul.f32 %v467_v8, %v222_v3 }
 0x174   : > { %v238_v12 = vmul.f32 %v370_v9, %v229_v10 }
 0x176   : > { %v243_v13 = vadd.f32 %v371_v11, %v238_v12 }
 0x178   : > { %244 = vst [vmem:[%s216_s23] sm:$0xff] %v243_v13 }
 0x179   : > { %535 = shalt.err (!%p532_p5)
}
 0x17a   : > { %s536_s25 = scalar_lea.hbm %s259_s7, 128  ;;  %s540_s3 = scalar_lea.hbm %s858_s20, 512 }
 0x17b   : > { %p537_p7 = scmp.ne.s32.totalorder %s259_s7, %s536_s25  ;;  %p541_p11 = scmp.lt.s32.totalorder %s259_s7, %s858_s20 }
 0x17c   : > { %p542_p12 = scmp.lt.s32.totalorder %s540_s3, %s536_s25 }
 0x17d   : > { %p538_p9 = pnand %p537_p7, %p859_p4 }
 0x17e   : > { %p543_p3 = por %p542_p12, %p541_p11 }
 0x17f   : > { %p539_p6 = pneg %p538_p9 }
 0x181   : > { %p544_p1 = pnand %p543_p3, %p539_p6 }
 0x183   : > { %547 = shalt.err (!%p544_p1)
}
 0x184   : > { %383 = dma.vmem_to_hbm [thread:$0]  (%p859_p4), %s262_s30, 128, %s259_s7, %s246_s21  }
 0x185 PF: > { %s860_s22 = sld [smem:[#allocation11_spill]]  ;;  %p400_p8 = scmp.ge.s32.totalorder %s622_s19, 2 }
 0x186   : > { %s861_s26 = sld [smem:[#allocation12_spill]] }
 0x18b   : > { %s273_s11 = sand.u32 1, %s860_s22  }
 0x18c   : > { %p862_p13 = scmp.ne.s32.totalorder %s861_s26, 0  ;;  %s274_s28 = scalar_lea.sflag [#allocation4], %s273_s11 }
 0x18e   : > { %p394_p10 = pnand %p400_p8, %p862_p13 }
 0x190   : > { %p395_p0 = pneg %p394_p10 }
 0x192   : > { %589 = dma.done.wait (%p395_p0), %s274_s28, 128  }
 0x193   : > { %591 = vsyncadd (%p395_p0), %s274_s28, 4294967168  ;;  %s20_s19 = sadd.s32 1, %s622_s19   ;;  %s863_s9 = sld [smem:[#allocation13_spill]] }
 0x194   : > { %p17_p2 = scmp.ge.s32.totalorder %s20_s19, 6   ;;  %s864_s12 = smov %s598_s13 }
 0x195   : > { %s865_s13 = smov %s602_s14  ;;  %s866_s14 = smov %s752_s5 }
 0x196   : > { %s867_s15 = smov %s614_s17  ;;  %s868_s16 = smov %s618_s18 }
 0x197   : > { %s870_s18 = smov %s876_s6  ;;  %19 = sbr.rel (!%p17_p2) target bundleno = 11 (0xb), region = 83 }
 0x199   : > { %s869_s17 = smov %s863_s9 }
 0x19c   :  { %279 = vsyncpa [#allocation3], 1 }
 0x19d   :  { %281 = vsyncpa [#allocation3 + $0x1], 1 }
 0x19e   :  { %282 = vsyncpa [#allocation6], 1 }
 0x19f   :  { %283 = vsyncpa [#allocation4], 1 }
 0x1a0   :  { %285 = vsyncpa [#allocation4 + $0x1], 1 }

</bundles_post_ra>
